<compile_context>
chip_gen: v7x
topology: tpu7x:2x2x1
jax: 0.10.0
libtpu: 0.0.40
codegen_flags: <defaults>
</compile_context>

<pallas_src>
import functools

import jax
import jax.numpy as jnp
from jax.experimental import pallas as pl
from jax.experimental.pallas import tpu as pltpu

LANES = 128          # TPU lane width
ROW_TILE = 512       # row tile used when the problem is large enough to split
SINGLE_BLOCK_MAX = 1024  # below this many rows, run as one full-extent block


# ----------------------------- fused kernel --------------------------------
def _make_fused_kernel(num_layers):
    """Kernel over a (tm, 128) lane-dense row tile.

    w_ref: (2*num_layers, 128, 128) block-diagonal folded weights (conv*bn_scale)
    s_ref: (2*num_layers, 1, 128)   folded per-channel shifts (bias/BN), tiled to lanes
    """

    def kernel(x_ref, w_ref, s_ref, o_ref):
        x = x_ref[...]  # (tm, 128) f32
        for l in range(num_layers):  # static unroll over layers
            # conv1 (1x1) + bn1 + relu
            y = jnp.dot(x, w_ref[2 * l], preferred_element_type=jnp.float32)
            y = jnp.maximum(y + s_ref[2 * l], 0.0)
            # conv2 (1x1) + bn2
            y = jnp.dot(y, w_ref[2 * l + 1], preferred_element_type=jnp.float32)
            y = y + s_ref[2 * l + 1]
            # residual add + relu
            x = jnp.maximum(y + x, 0.0)
        o_ref[...] = x

    return kernel


# ------------------------------ wrapper -------------------------------------
def fold_params(params, C, eps=1e-5):
    """Fold conv bias + BatchNorm (eval) into lane-dense block-diag weights/shifts.

    bn(x @ W + b) = x @ (W * s) + (beta + (b - m) * s),   s = gamma / sqrt(var + eps)
    Block-diagonal kron(I_P, W*s) applies the same (C, C) matrix to each of the
    P = 128 // C pixels packed into one 128-lane row.
    """
    assert LANES % C == 0, "lane-packed path requires C | 128"
    P = LANES // C
    eyeP = jnp.eye(P, dtype=jnp.float32)
    ws, ss = [], []
    for p in params:
        for w, b, g, beta, m, v in (
            (p["w1"], p["b1"], p["g1"], p["beta1"], p["m1"], p["v1"]),
            (p["w2"], p["b2"], p["g2"], p["beta2"], p["m2"], p["v2"]),
        ):
            s = g / jnp.sqrt(v + eps)                       # (C,)
            ws.append(jnp.kron(eyeP, w * s[None, :]))       # (128, 128)
            ss.append(jnp.tile(beta + (b - m) * s, P)[None, :])  # (1, 128)
    return jnp.stack(ws), jnp.stack(ss)  # (2L, 128, 128), (2L, 1, 128)


def _choose_row_tile(M):
    """Largest-sensible lane-dense row tile.

    Small problems -> one full-extent block (avoid per-step overhead).
    Large problems -> fixed 512-row tile (near HBM roofline, megacore-friendly);
    rows are zero-padded to a multiple of the tile by the caller if needed.
    """
    if M <= SINGLE_BLOCK_MAX:
        return M
    return ROW_TILE


@functools.partial(jax.jit, static_argnames=("num_layers",))
def resnet1x1_forward(x_nchw, w_all, s_all, *, num_layers):
    """Matches Resnet1x1.forward on NCHW input (BN in inference mode)."""
    N, C, H, W = x_nchw.shape
    assert LANES % C == 0, "lane-packed path requires C | 128"
    total = N * C * H * W
    assert total % LANES == 0, "N*H*W*C must be a multiple of 128"
    assert w_all.shape[0] == 2 * num_layers

    # NCHW -> NHWC -> free lane-dense view (M, 128); each row holds 128//C pixels.
    M = total // LANES
    x = jnp.transpose(x_nchw, (0, 2, 3, 1)).reshape(M, LANES)

    tm = _choose_row_tile(M)
    M_pad = ((M + tm - 1) // tm) * tm
    if M_pad != M:
        x = jnp.pad(x, ((0, M_pad - M), (0, 0)))
    grid = (M_pad // tm,)

    L2 = w_all.shape[0]
    out = pl.pallas_call(
        _make_fused_kernel(num_layers),
        out_shape=jax.ShapeDtypeStruct((M_pad, LANES), jnp.float32),
        grid=grid,
        in_specs=[
            pl.BlockSpec((tm, LANES), lambda i: (i, 0)),
            pl.BlockSpec((L2, LANES, LANES), lambda i: (0, 0, 0)),
            pl.BlockSpec((L2, 1, LANES), lambda i: (0, 0, 0)),
        ],
        out_specs=pl.BlockSpec((tm, LANES), lambda i: (i, 0)),
        compiler_params=pltpu.CompilerParams(
            dimension_semantics=("parallel",)),
    )(x, w_all, s_all)

    if M_pad != M:
        out = out[:M]
    return jnp.transpose(out.reshape(N, H, W, C), (0, 3, 1, 2))


# -------------------------- synthetic parameters ----------------------------
def init_residual_block_params(key, C):
    """Deterministic synthetic params for one ResidualBlock (1x1, C -> C)."""
    ks = jax.random.split(key, 12)
    bound = 1.0 / jnp.sqrt(C)  # fan_in = C * 1 * 1

    def conv_params(kw, kb):
        # (C_in, C_out) layout (PyTorch 1x1 conv weight is (C_out, C_in, 1, 1)).
        w = jax.random.uniform(kw, (C, C), jnp.float32, -bound, bound)
        b = jax.random.uniform(kb, (C,), jnp.float32, -bound, bound)
        return w, b

    def bn_params(kg, kb, km, kv):
        gamma = 1.0 + 0.1 * jax.random.normal(kg, (C,), jnp.float32)
        beta = 0.1 * jax.random.normal(kb, (C,), jnp.float32)
        r_mean = 0.1 * jax.random.normal(km, (C,), jnp.float32)
        r_var = 1.0 + 0.1 * jax.random.uniform(kv, (C,), jnp.float32)
        return gamma, beta, r_mean, r_var

    w1, b1 = conv_params(ks[0], ks[1])
    w2, b2 = conv_params(ks[2], ks[3])
    g1, beta1, m1, v1 = bn_params(ks[4], ks[5], ks[6], ks[7])
    g2, beta2, m2, v2 = bn_params(ks[8], ks[9], ks[10], ks[11])
    return dict(w1=w1, b1=b1, g1=g1, beta1=beta1, m1=m1, v1=v1,
                w2=w2, b2=b2, g2=g2, beta2=beta2, m2=m2, v2=v2)


# ----------------------------- pure-JAX reference ---------------------------
def _ref_forward(x_nchw, params, eps=1e-5):
    x = jnp.transpose(x_nchw, (0, 2, 3, 1))  # NHWC; 1x1 conv == per-pixel matmul

    def bn(z, g, beta, m, v):
        return (z - m) * (g / jnp.sqrt(v + eps)) + beta

    for p in params:
        y = bn(x @ p["w1"] + p["b1"], p["g1"], p["beta1"], p["m1"], p["v1"])
        y = jnp.maximum(y, 0.0)
        y = bn(y @ p["w2"] + p["b2"], p["g2"], p["beta2"], p["m2"], p["v2"])
        x = jnp.maximum(y + x, 0.0)
    return jnp.transpose(x, (0, 3, 1, 2))


if __name__ == "__main__":
    key = jax.random.PRNGKey(0)
    N, C, H, W = 2, 8, 16, 16   # args['in_ch'] = 8
    layer_num = 2               # args['layer_num'] = 2

    k_x, k_p = jax.random.split(key)
    x_nchw = jax.random.normal(k_x, (N, C, H, W), jnp.float32)

    params = [init_residual_block_params(k, C)
              for k in jax.random.split(k_p, layer_num)]

    w_all, s_all = fold_params(params, C)
    out = resnet1x1_forward(x_nchw, w_all, s_all, num_layers=layer_num)
    out = jax.block_until_ready(out)

    ref = jax.block_until_ready(_ref_forward(x_nchw, params))
    assert out.shape == (N, C, H, W)
    max_err = float(jnp.max(jnp.abs(out - ref)))
    assert jnp.allclose(out, ref, rtol=1e-4, atol=1e-4), max_err

    print("KERNEL_OK")
</pallas_src>

<mosaic_0001>
module attributes {stable_mosaic.version = 11 : i64} {
  func.func @kernel(%arg0: i32, %arg1: memref<32x128xf32, #tpu.memory_space<vmem>>, %arg2: memref<4x128x128xf32, #tpu.memory_space<vmem>>, %arg3: memref<4x1x128xf32, #tpu.memory_space<vmem>>, %arg4: memref<32x128xf32, #tpu.memory_space<vmem>>) attributes {dimension_semantics = [#tpu.dimension_semantics<parallel>], iteration_bounds = array<i64: 1>, scalar_prefetch = 0 : i64, scratch_operands = 0 : i64, tpu.core_type = #tpu.core_type<tc>, window_params = [{transform_indices = @transform_0, window_bounds = array<i64: 32, 128>}, {pipeline_mode = #tpu.pipeline_mode<synchronous>, transform_indices = @transform_1, window_bounds = array<i64: 4, 128, 128>}, {pipeline_mode = #tpu.pipeline_mode<synchronous>, transform_indices = @transform_2, window_bounds = array<i64: 4, 1, 128>}, {transform_indices = @transform_3, window_bounds = array<i64: 32, 128>}]} {
    %c0 = arith.constant 0 : index
    %c0_0 = arith.constant 0 : index
    %0 = vector.load %arg1[%c0, %c0_0] : memref<32x128xf32, #tpu.memory_space<vmem>>, vector<32x128xf32>
    %c0_1 = arith.constant 0 : index
    %c0_2 = arith.constant 0 : index
    %c0_3 = arith.constant 0 : index
    %1 = vector.load %arg2[%c0_1, %c0_2, %c0_3] : memref<4x128x128xf32, #tpu.memory_space<vmem>>, vector<1x128x128xf32>
    %2 = vector.shape_cast %1 : vector<1x128x128xf32> to vector<128x128xf32>
    %cst = arith.constant dense<0.000000e+00> : vector<32x128xf32>
    %3 = tpu.matmul %0, %2, %cst {dimension_numbers = #tpu.dot_dimension_numbers<[1], [0], [0], [1], [0, 0, 1, 1], [], []>} : vector<32x128xf32>, vector<128x128xf32>, vector<32x128xf32> -> vector<32x128xf32>
    %c0_4 = arith.constant 0 : index
    %c0_5 = arith.constant 0 : index
    %c0_6 = arith.constant 0 : index
    %4 = vector.load %arg3[%c0_4, %c0_5, %c0_6] : memref<4x1x128xf32, #tpu.memory_space<vmem>>, vector<1x1x128xf32>
    %5 = vector.shape_cast %4 : vector<1x1x128xf32> to vector<1x128xf32>
    %6 = vector.broadcast %5 : vector<1x128xf32> to vector<32x128xf32>
    %7 = arith.addf %3, %6 : vector<32x128xf32>
    %cst_7 = arith.constant 0.000000e+00 : f32
    %8 = vector.broadcast %cst_7 : f32 to vector<32x128xf32>
    %9 = arith.maximumf %7, %8 : vector<32x128xf32>
    %c1 = arith.constant 1 : index
    %c0_8 = arith.constant 0 : index
    %c0_9 = arith.constant 0 : index
    %10 = vector.load %arg2[%c1, %c0_8, %c0_9] : memref<4x128x128xf32, #tpu.memory_space<vmem>>, vector<1x128x128xf32>
    %11 = vector.shape_cast %10 : vector<1x128x128xf32> to vector<128x128xf32>
    %cst_10 = arith.constant dense<0.000000e+00> : vector<32x128xf32>
    %12 = tpu.matmul %9, %11, %cst_10 {dimension_numbers = #tpu.dot_dimension_numbers<[1], [0], [0], [1], [0, 0, 1, 1], [], []>} : vector<32x128xf32>, vector<128x128xf32>, vector<32x128xf32> -> vector<32x128xf32>
    %c1_11 = arith.constant 1 : index
    %c0_12 = arith.constant 0 : index
    %c0_13 = arith.constant 0 : index
    %13 = vector.load %arg3[%c1_11, %c0_12, %c0_13] : memref<4x1x128xf32, #tpu.memory_space<vmem>>, vector<1x1x128xf32>
    %14 = vector.shape_cast %13 : vector<1x1x128xf32> to vector<1x128xf32>
    %15 = vector.broadcast %14 : vector<1x128xf32> to vector<32x128xf32>
    %16 = arith.addf %12, %15 : vector<32x128xf32>
    %17 = arith.addf %16, %0 : vector<32x128xf32>
    %cst_14 = arith.constant 0.000000e+00 : f32
    %18 = vector.broadcast %cst_14 : f32 to vector<32x128xf32>
    %19 = arith.maximumf %17, %18 : vector<32x128xf32>
    %c2 = arith.constant 2 : index
    %c0_15 = arith.constant 0 : index
    %c0_16 = arith.constant 0 : index
    %20 = vector.load %arg2[%c2, %c0_15, %c0_16] : memref<4x128x128xf32, #tpu.memory_space<vmem>>, vector<1x128x128xf32>
    %21 = vector.shape_cast %20 : vector<1x128x128xf32> to vector<128x128xf32>
    %cst_17 = arith.constant dense<0.000000e+00> : vector<32x128xf32>
    %22 = tpu.matmul %19, %21, %cst_17 {dimension_numbers = #tpu.dot_dimension_numbers<[1], [0], [0], [1], [0, 0, 1, 1], [], []>} : vector<32x128xf32>, vector<128x128xf32>, vector<32x128xf32> -> vector<32x128xf32>
    %c2_18 = arith.constant 2 : index
    %c0_19 = arith.constant 0 : index
    %c0_20 = arith.constant 0 : index
    %23 = vector.load %arg3[%c2_18, %c0_19, %c0_20] : memref<4x1x128xf32, #tpu.memory_space<vmem>>, vector<1x1x128xf32>
    %24 = vector.shape_cast %23 : vector<1x1x128xf32> to vector<1x128xf32>
    %25 = vector.broadcast %24 : vector<1x128xf32> to vector<32x128xf32>
    %26 = arith.addf %22, %25 : vector<32x128xf32>
    %cst_21 = arith.constant 0.000000e+00 : f32
    %27 = vector.broadcast %cst_21 : f32 to vector<32x128xf32>
    %28 = arith.maximumf %26, %27 : vector<32x128xf32>
    %c3 = arith.constant 3 : index
    %c0_22 = arith.constant 0 : index
    %c0_23 = arith.constant 0 : index
    %29 = vector.load %arg2[%c3, %c0_22, %c0_23] : memref<4x128x128xf32, #tpu.memory_space<vmem>>, vector<1x128x128xf32>
    %30 = vector.shape_cast %29 : vector<1x128x128xf32> to vector<128x128xf32>
    %cst_24 = arith.constant dense<0.000000e+00> : vector<32x128xf32>
    %31 = tpu.matmul %28, %30, %cst_24 {dimension_numbers = #tpu.dot_dimension_numbers<[1], [0], [0], [1], [0, 0, 1, 1], [], []>} : vector<32x128xf32>, vector<128x128xf32>, vector<32x128xf32> -> vector<32x128xf32>
    %c3_25 = arith.constant 3 : index
    %c0_26 = arith.constant 0 : index
    %c0_27 = arith.constant 0 : index
    %32 = vector.load %arg3[%c3_25, %c0_26, %c0_27] : memref<4x1x128xf32, #tpu.memory_space<vmem>>, vector<1x1x128xf32>
    %33 = vector.shape_cast %32 : vector<1x1x128xf32> to vector<1x128xf32>
    %34 = vector.broadcast %33 : vector<1x128xf32> to vector<32x128xf32>
    %35 = arith.addf %31, %34 : vector<32x128xf32>
    %36 = arith.addf %35, %19 : vector<32x128xf32>
    %cst_28 = arith.constant 0.000000e+00 : f32
    %37 = vector.broadcast %cst_28 : f32 to vector<32x128xf32>
    %38 = arith.maximumf %36, %37 : vector<32x128xf32>
    %c0_29 = arith.constant 0 : index
    %c0_30 = arith.constant 0 : index
    %39 = vector.load %arg4[%c0_29, %c0_30] : memref<32x128xf32, #tpu.memory_space<vmem>>, vector<32x128xf32>
    tpu.vector_store %arg4[%c0_29, %c0_30], %38 {strides = array<i32>} : memref<32x128xf32, #tpu.memory_space<vmem>>, vector<32x128xf32>,
    return
  }
  func.func @transform_0(%arg0: i32) -> (i32, i32) {
    %c0_i32 = arith.constant 0 : i32
    %c0_i32_0 = arith.constant 0 : i32
    return %arg0, %c0_i32 : i32, i32
  }
  func.func @transform_1(%arg0: i32) -> (i32, i32, i32) {
    %c0_i32 = arith.constant 0 : i32
    %c0_i32_0 = arith.constant 0 : i32
    %c0_i32_1 = arith.constant 0 : i32
    %c0_i32_2 = arith.constant 0 : i32
    return %c0_i32, %c0_i32_0, %c0_i32_1 : i32, i32, i32
  }
  func.func @transform_2(%arg0: i32) -> (i32, i32, i32) {
    %c0_i32 = arith.constant 0 : i32
    %c0_i32_0 = arith.constant 0 : i32
    %c0_i32_1 = arith.constant 0 : i32
    %c0_i32_2 = arith.constant 0 : i32
    return %c0_i32, %c0_i32_0, %c0_i32_1 : i32, i32, i32
  }
  func.func @transform_3(%arg0: i32) -> (i32, i32) {
    %c0_i32 = arith.constant 0 : i32
    %c0_i32_0 = arith.constant 0 : i32
    return %arg0, %c0_i32 : i32, i32
  }
}

</mosaic_0001>

<bundles_post_ra>
// kernel: resnet1x1_forward.1
= control target key start
LH: loop header
LB: loop body
LE: loop exit
PB: predicated region body
PF: predicated region fallthrough
CT: control target
= control target key end

     0   :  { %s1167_s1 = inlined_call_operand.vmem [shape: f32[4,128,128], index: 1, kind: input, shape index: {}]   ;;  %s1168_s0 = inlined_call_operand.vmem [shape: f32[32,128], index: 0, kind: input, shape index: {}]   ;;  %s1169_s2 = inlined_call_operand.vmem [shape: f32[4,1,128], index: 2, kind: input, shape index: {}]   ;;  %s1170_s3 = inlined_call_operand.vmem [shape: f32[32,128], index: 3, kind: output, shape index: {}]  }
   0x1   :  { %v18_v0 = vld [vmem:[%s1167_s1] sm:$0xff]  ;;  %v19_v1 = vld [vmem:[%s1167_s1 + $0x8] sm:$0xff]  ;;  %v20_v2 = vld [vmem:[%s1167_s1 + $0x10] sm:$0xff] }
   0x2   :  { %v775_v3 = vpack.c.bf16 %v19_v1, %v18_v0  ;;  %v21_v4 = vld [vmem:[%s1167_s1 + $0x18] sm:$0xff]  ;;  %v22_v6 = vld [vmem:[%s1167_s1 + $0x20] sm:$0xff]  ;;  %v23_v7 = vld [vmem:[%s1167_s1 + $0x28] sm:$0xff] }
   0x3   :  { %v779_v5 = vpack.c.bf16 %v21_v4, %v20_v2  ;;  %v783_v8 = vpack.c.bf16 %v23_v7, %v22_v6  ;;  %v944_v9 = vld [vmem:[%s1168_s0] sm:$0xff]  ;;  %v24_v10 = vld [vmem:[%s1167_s1 + $0x30] sm:$0xff]  ;;  %v25_v11 = vld [vmem:[%s1167_s1 + $0x38] sm:$0xff] }
   0x4   :  { %776 = vmatprep.subr.bf16.mxu0 %v775_v3  ;;  %655 = vmatprep.mubr.f32.mxu0 %v944_v9  ;;  %v489_v12 = vld [vmem:[%s1167_s1 + $0x80] sm:$0xff]  ;;  %v490_v13 = vld [vmem:[%s1167_s1 + $0x88] sm:$0xff]  ;;  %v491_v14 = vld [vmem:[%s1167_s1 + $0x90] sm:$0xff]  ;;  %v787_v18 = vpack.c.bf16 %v25_v11, %v24_v10 }
   0x5   :  { %778 = vmatpush3.bf16.msra.mxu0 %v775_v3  ;;  %v492_v15 = vld [vmem:[%s1167_s1 + $0x98] sm:$0xff]  ;;  %v807_v16 = vpack.c.bf16 %v490_v13, %v489_v12  ;;  %v493_v19 = vld [vmem:[%s1167_s1 + $0xa0] sm:$0xff]  ;;  %v494_v20 = vld [vmem:[%s1167_s1 + $0xa8] sm:$0xff] }
   0x6   :  { %780 = vmatprep.subr.bf16.mxu0 %v779_v5  ;;  %v811_v17 = vpack.c.bf16 %v492_v15, %v491_v14  ;;  %v26_v21 = vld [vmem:[%s1167_s1 + $0x40] sm:$0xff]  ;;  %v27_v22 = vld [vmem:[%s1167_s1 + $0x48] sm:$0xff]  ;;  %v815_v23 = vpack.c.bf16 %v494_v20, %v493_v19  ;;  %v495_v25 = vld [vmem:[%s1167_s1 + $0xb0] sm:$0xff] }
   0x7   :  { %808 = vmatprep.subr.bf16.mxu1 %v807_v16  ;;  %v791_v24 = vpack.c.bf16 %v27_v22, %v26_v21  ;;  %v496_v26 = vld [vmem:[%s1167_s1 + $0xb8] sm:$0xff]  ;;  %v28_v27 = vld [vmem:[%s1167_s1 + $0x50] sm:$0xff]  ;;  %v497_v31 = vld [vmem:[%s1167_s1 + $0xc0] sm:$0xff] }
   0x8   :  { %810 = vmatpush3.bf16.msra.mxu1 %v807_v16  ;;  %v29_v28 = vld [vmem:[%s1167_s1 + $0x58] sm:$0xff]  ;;  %v819_v29 = vpack.c.bf16 %v496_v26, %v495_v25  ;;  %v498_v32 = vld [vmem:[%s1167_s1 + $0xc8] sm:$0xff]  ;;  %v30_v33 = vld [vmem:[%s1167_s1 + $0x60] sm:$0xff] }
   0x9   :  { %782 = vmatpush3.bf16.msra.mxu0 %v779_v5  ;;  %812 = vmatprep.subr.bf16.mxu1 %v811_v17  ;;  %v795_v30 = vpack.c.bf16 %v29_v28, %v28_v27  ;;  %v31_v34 = vld [vmem:[%s1167_s1 + $0x68] sm:$0xff]  ;;  %v823_v35 = vpack.c.bf16 %v498_v32, %v497_v31  ;;  %v499_v37 = vld [vmem:[%s1167_s1 + $0xd0] sm:$0xff]  ;;  %v500_v38 = vld [vmem:[%s1167_s1 + $0xd8] sm:$0xff] }
   0xa   :  { %784 = vmatprep.subr.bf16.mxu0 %v783_v8  ;;  %v799_v36 = vpack.c.bf16 %v31_v34, %v30_v33  ;;  %v32_v39 = vld [vmem:[%s1167_s1 + $0x70] sm:$0xff]  ;;  %v33_v40 = vld [vmem:[%s1167_s1 + $0x78] sm:$0xff]  ;;  %v827_v41 = vpack.c.bf16 %v500_v38, %v499_v37  ;;  %v501_v43 = vld [vmem:[%s1167_s1 + $0xe0] sm:$0xff] }
   0xb   :  { %v803_v42 = vpack.c.bf16 %v33_v40, %v32_v39  ;;  %v502_v44 = vld [vmem:[%s1167_s1 + $0xe8] sm:$0xff]  ;;  %v1027_v47 = vld [vmem:[%s1168_s0 + $0x10] sm:$0xff]  ;;  %v1034_v48 = vld [vmem:[%s1168_s0 + $0x18] sm:$0xff] }
   0xc   :  { %814 = vmatpush3.bf16.msra.mxu1 %v811_v17  ;;  %v831_v45 = vpack.c.bf16 %v502_v44, %v501_v43  ;;  %v1022_v46 = vld [vmem:[%s1168_s0 + $0x8] sm:$0xff]  ;;  %v503_v49 = vld [vmem:[%s1167_s1 + $0xf0] sm:$0xff]  ;;  %v504_v50 = vld [vmem:[%s1167_s1 + $0xf8] sm:$0xff] }
   0xd   :  { %786 = vmatpush3.bf16.msra.mxu0 %v783_v8  ;;  %816 = vmatprep.subr.bf16.mxu1 %v815_v23  ;;  %v835_v51 = vpack.c.bf16 %v504_v50, %v503_v49  ;;  %v507_v52 = vld [vmem:[%s1167_s1 + $0x100] sm:$0xff]  ;;  %v508_v53 = vld [vmem:[%s1167_s1 + $0x108] sm:$0xff]  ;;  %v509_v54 = vld [vmem:[%s1167_s1 + $0x110] sm:$0xff] }
   0xe   :  { %788 = vmatprep.subr.bf16.mxu0 %v787_v18  ;;  %v839_v55 = vpack.c.bf16 %v508_v53, %v507_v52  ;;  %v510_v56 = vld [vmem:[%s1167_s1 + $0x118] sm:$0xff]  ;;  %v511_v58 = vld [vmem:[%s1167_s1 + $0x120] sm:$0xff]  ;;  %v512_v59 = vld [vmem:[%s1167_s1 + $0x128] sm:$0xff] }
   0xf   :  { %v843_v57 = vpack.c.bf16 %v510_v56, %v509_v54  ;;  %v847_v60 = vpack.c.bf16 %v512_v59, %v511_v58  ;;  %v513_v61 = vld [vmem:[%s1167_s1 + $0x130] sm:$0xff]  ;;  %v514_v62 = vld [vmem:[%s1167_s1 + $0x138] sm:$0xff]  ;;  %v515_v0 = vld [vmem:[%s1167_s1 + $0x140] sm:$0xff] }
  0x10   :  { %818 = vmatpush3.bf16.msra.mxu1 %v815_v23  ;;  %v851_v63 = vpack.c.bf16 %v514_v62, %v513_v61  ;;  %v516_v1 = vld [vmem:[%s1167_s1 + $0x148] sm:$0xff]  ;;  %v517_v3 = vld [vmem:[%s1167_s1 + $0x150] sm:$0xff]  ;;  %v518_v4 = vld [vmem:[%s1167_s1 + $0x158] sm:$0xff] }
  0x11   :  { %790 = vmatpush3.bf16.msra.mxu0 %v787_v18  ;;  %820 = vmatprep.subr.bf16.mxu1 %v819_v29  ;;  %v855_v2 = vpack.c.bf16 %v516_v1, %v515_v0  ;;  %v859_v5 = vpack.c.bf16 %v518_v4, %v517_v3  ;;  %v488_v6 = vld [vmem:[%s1169_s2] ss:$0 sm:$0xff]  ;;  %v520_v21 = vld [vmem:[%s1167_s1 + $0x168] sm:$0xff]  ;;  %v521_v23 = vld [vmem:[%s1167_s1 + $0x170] sm:$0xff] }
  0x12   :  { %792 = vmatprep.subr.bf16.mxu0 %v791_v24  ;;  %v519_v20 = vld [vmem:[%s1167_s1 + $0x160] sm:$0xff]  ;;  %v526_v27 = vld [vmem:[%s1167_s1 + $0x188] sm:$0xff]  ;;  %v527_v28 = vld [vmem:[%s1167_s1 + $0x190] sm:$0xff] }
  0x13   :  { %v863_v22 = vpack.c.bf16 %v520_v21, %v519_v20  ;;  %v525_v26 = vld [vmem:[%s1167_s1 + $0x180] sm:$0xff]  ;;  %v530_v33 = vld [vmem:[%s1167_s1 + $0x1a8] sm:$0xff] }
  0x14   :  { %822 = vmatpush3.bf16.msra.mxu1 %v819_v29  ;;  %v871_v29 = vpack.c.bf16 %v526_v27, %v525_v26  ;;  %v529_v32 = vld [vmem:[%s1167_s1 + $0x1a0] sm:$0xff]  ;;  %v534_v39 = vld [vmem:[%s1167_s1 + $0x1c8] sm:$0xff] }
  0x15   :  { %794 = vmatpush3.bf16.msra.mxu0 %v791_v24  ;;  %824 = vmatprep.subr.bf16.mxu1 %v823_v35  ;;  %v522_v24 = vld [vmem:[%s1167_s1 + $0x178] sm:$0xff]  ;;  %v879_v34 = vpack.c.bf16 %v530_v33, %v529_v32  ;;  %v533_v38 = vld [vmem:[%s1167_s1 + $0x1c0] sm:$0xff] }
  0x16   :  { %796 = vmatprep.subr.bf16.mxu0 %v795_v30  ;;  %v867_v25 = vpack.c.bf16 %v522_v24, %v521_v23  ;;  %v887_v40 = vpack.c.bf16 %v534_v39, %v533_v38  ;;  %v537_v44 = vld [vmem:[%s1167_s1 + $0x1e0] sm:$0xff] }
  0x17   :  { %v506_v50 = vld [vmem:[%s1169_s2 + $0x1] ss:$0 sm:$0xff] }
  0x18   :  { %826 = vmatpush3.bf16.msra.mxu1 %v823_v35  ;;  %v531_v35 = vld [vmem:[%s1167_s1 + $0x1b0] sm:$0xff] }
  0x19   :  { %798 = vmatpush3.bf16.msra.mxu0 %v795_v30  ;;  %828 = vmatprep.subr.bf16.mxu1 %v827_v41  ;;  %v528_v30 = vld [vmem:[%s1167_s1 + $0x198] sm:$0xff] }
  0x1a   :  { %800 = vmatprep.subr.bf16.mxu0 %v799_v36  ;;  %v875_v31 = vpack.c.bf16 %v528_v30, %v527_v28 }
  0x1c   :  { %830 = vmatpush3.bf16.msra.mxu1 %v827_v41  ;;  %v535_v41 = vld [vmem:[%s1167_s1 + $0x1d0] sm:$0xff] }
  0x1d   :  { %802 = vmatpush3.bf16.msra.mxu0 %v799_v36  ;;  %832 = vmatprep.subr.bf16.mxu1 %v831_v45  ;;  %v532_v36 = vld [vmem:[%s1167_s1 + $0x1b8] sm:$0xff] }
  0x1e   :  { %804 = vmatprep.subr.bf16.mxu0 %v803_v42  ;;  %v883_v37 = vpack.c.bf16 %v532_v36, %v531_v35 }
  0x20   :  { %834 = vmatpush3.bf16.msra.mxu1 %v831_v45  ;;  %v538_v45 = vld [vmem:[%s1167_s1 + $0x1e8] sm:$0xff] }
  0x21   :  { %806 = vmatpush3.bf16.msra.mxu0 %v803_v42  ;;  %836 = vmatprep.subr.bf16.mxu1 %v835_v51  ;;  %v536_v42 = vld [vmem:[%s1167_s1 + $0x1d8] sm:$0xff]  ;;  %v895_v49 = vpack.c.bf16 %v538_v45, %v537_v44 }
  0x22   :  { %840 = vmatprep.subr.bf16.mxu0 %v839_v55  ;;  %v891_v43 = vpack.c.bf16 %v536_v42, %v535_v41 }
  0x24   :  { %656 = vmatmul.mubr.f32.vlgmr.msra.gmra.mrb[0].mxu0 %v1022_v46  ;;  %838 = vmatpush3.bf16.msra.mxu1 %v835_v51 }
  0x25   :  { %658 = vmatprep.mubr.f32.mxu0 %v1027_v47  ;;  %842 = vmatpush3.bf16.msra.mxu0 %v839_v55 }
  0x26   :  { %844 = vmatprep.subr.bf16.mxu0 %v843_v57  ;;  %872 = vmatprep.subr.bf16.mxu1 %v871_v29 }
  0x28   :  { %659 = vmatmul.mubr.f32.gmra.mrb[2].mxu0 %v1034_v48 }
  0x29   :  { %846 = vmatpush3.bf16.msra.mxu0 %v843_v57 }
  0x2a   :  { %848 = vmatprep.subr.bf16.mxu0 %v847_v60 }
  0x2d   :  { %850 = vmatpush3.bf16.msra.mxu0 %v847_v60 }
  0x2e   :  { %852 = vmatprep.subr.bf16.mxu0 %v851_v63 }
  0x31   :  { %854 = vmatpush3.bf16.msra.mxu0 %v851_v63 }
  0x32   :  { %856 = vmatprep.subr.bf16.mxu0 %v855_v2 }
  0x35   :  { %858 = vmatpush3.bf16.msra.mxu0 %v855_v2 }
  0x36   :  { %860 = vmatprep.subr.bf16.mxu0 %v859_v5 }
  0x39   :  { %862 = vmatpush3.bf16.msra.mxu0 %v859_v5 }
  0x3a   :  { %864 = vmatprep.subr.bf16.mxu0 %v863_v22 }
  0x3d   :  { %866 = vmatpush3.bf16.msra.mxu0 %v863_v22 }
  0x3e   :  { %868 = vmatprep.subr.bf16.mxu0 %v867_v25 }
  0x41   :  { %870 = vmatpush3.bf16.msra.mxu0 %v867_v25 }
  0xf7   :  { %v657_v7 = vpop.f32.mrb[0].mxu0 }
  0xf8   :  { %v113_v8 = vadd.f32 %v657_v7, %v488_v6  ;;  %v107_v10 = vpop.f32.mrb[1].mxu0 }
  0xf9   :  { %v108_v11 = vadd.f32 %v488_v6, %v107_v10 }
  0xfa   :  { %v127_v14 = vmax.f32 %v113_v8, 0.0 }
  0xfb   :  { %v660_v12 = vpop.f32.mrb[2].mxu0  ;;  %v126_v13 = vmax.f32 %v108_v11, 0.0 }
  0xfc   :  { %v123_v15 = vadd.f32 %v660_v12, %v488_v6  ;;  %v117_v16 = vpop.f32.mrb[3].mxu0 }
  0xfd   :  { %v118_v17 = vadd.f32 %v488_v6, %v117_v16  ;;  %693 = vmatprep.mubr.f32.mxu1 %v126_v13  ;;  %v542_v16 = vld [vmem:[%s1169_s2 + $0x3] ss:$0 sm:$0xff] }
  0xfe   :  { %694 = vmatmul.mubr.f32.vlgmr.msra.gmra.mrb[0].mxu1 %v127_v14  ;;  %v129_v19 = vmax.f32 %v123_v15, 0.0 }
  0xff   :  { %v128_v18 = vmax.f32 %v118_v17, 0.0  ;;  %874 = vmatpush3.bf16.msra.mxu1 %v871_v29 }
 0x100   :  { %876 = vmatprep.subr.bf16.mxu1 %v875_v31 }
 0x101   :  { %696 = vmatprep.mubr.f32.mxu1 %v128_v18 }
 0x102   :  { %697 = vmatmul.mubr.f32.gmra.mrb[2].mxu1 %v129_v19 }
 0x103   :  { %878 = vmatpush3.bf16.msra.mxu1 %v875_v31 }
 0x104   :  { %880 = vmatprep.subr.bf16.mxu1 %v879_v34 }
 0x107   :  { %882 = vmatpush3.bf16.msra.mxu1 %v879_v34 }
 0x108   :  { %884 = vmatprep.subr.bf16.mxu1 %v883_v37 }
 0x10b   :  { %886 = vmatpush3.bf16.msra.mxu1 %v883_v37 }
 0x10c   :  { %888 = vmatprep.subr.bf16.mxu1 %v887_v40 }
 0x10f   :  { %890 = vmatpush3.bf16.msra.mxu1 %v887_v40 }
 0x110   :  { %892 = vmatprep.subr.bf16.mxu1 %v891_v43 }
 0x113   :  { %894 = vmatpush3.bf16.msra.mxu1 %v891_v43 }
 0x114   :  { %896 = vmatprep.subr.bf16.mxu1 %v895_v49 }
 0x117   :  { %898 = vmatpush3.bf16.msra.mxu1 %v895_v49 }
 0x1d1   :  { %v695_v51 = vpop.f32.mrb[0].mxu1 }
 0x1d2   :  { %v227_v52 = vadd.f32 %v695_v51, %v506_v50  ;;  %v221_v53 = vpop.f32.mrb[1].mxu1 }
 0x1d3   :  { %v222_v54 = vadd.f32 %v506_v50, %v221_v53 }
 0x1d4   :  { %v241_v55 = vadd.f32 %v227_v52, %v1022_v46  ;;  %v540_v46 = vld [vmem:[%s1167_s1 + $0x1f8] sm:$0xff] }
 0x1d5   :  { %v240_v56 = vadd.f32 %v222_v54, %v944_v9  ;;  %v698_v57 = vpop.f32.mrb[2].mxu1  ;;  %v539_v9 = vld [vmem:[%s1167_s1 + $0x1f0] sm:$0xff] }
 0x1d6   :  { %v237_v58 = vadd.f32 %v698_v57, %v506_v50  ;;  %v231_v59 = vpop.f32.mrb[3].mxu1  ;;  %v245_v62 = vmax.f32 %v241_v55, 0.0  ;;  %v899_v3 = vpack.c.bf16 %v540_v46, %v539_v9 }
 0x1d7   :  { %v244_v60 = vmax.f32 %v240_v56, 0.0  ;;  %v232_v61 = vadd.f32 %v506_v50, %v231_v59 }
 0x1d8   :  { %v243_v63 = vadd.f32 %v237_v58, %v1034_v48  ;;  %900 = vmatprep.subr.bf16.mxu1 %v899_v3 }
 0x1d9   :  { %v242_v0 = vadd.f32 %v232_v61, %v1027_v47  ;;  %731 = vmatprep.mubr.f32.mxu0 %v244_v60  ;;  %902 = vmatpush3.bf16.msra.mxu1 %v899_v3  ;;  %v524_v47 = vld [vmem:[%s1169_s2 + $0x2] ss:$0 sm:$0xff] }
 0x1da   :  { %732 = vmatmul.mubr.f32.vlgmr.msra.gmra.mrb[4].mxu0 %v245_v62  ;;  %v247_v2 = vmax.f32 %v243_v63, 0.0 }
 0x1db   :  { %v246_v1 = vmax.f32 %v242_v0, 0.0 }
 0x1dd   :  { %734 = vmatprep.mubr.f32.mxu0 %v246_v1 }
 0x1de   :  { %735 = vmatmul.mubr.f32.gmra.mrb[6].mxu0 %v247_v2 }
 0x2ad   :  { %v733_v48 = vpop.f32.mrb[4].mxu0 }
 0x2ae   :  { %v345_v4 = vadd.f32 %v733_v48, %v524_v47  ;;  %v339_v5 = vpop.f32.mrb[5].mxu0 }
 0x2af   :  { %v340_v6 = vadd.f32 %v524_v47, %v339_v5 }
 0x2b0   :  { %v359_v10 = vmax.f32 %v345_v4, 0.0 }
 0x2b1   :  { %v358_v7 = vmax.f32 %v340_v6, 0.0  ;;  %v736_v8 = vpop.f32.mrb[6].mxu0 }
 0x2b2   :  { %v355_v11 = vadd.f32 %v736_v8, %v524_v47  ;;  %v349_v12 = vpop.f32.mrb[7].mxu0 }
 0x2b3   :  { %v350_v13 = vadd.f32 %v524_v47, %v349_v12  ;;  %769 = vmatprep.mubr.f32.mxu1 %v358_v7 }
 0x2b4   :  { %770 = vmatmul.mubr.f32.vlgmr.msra.gmra.mrb[4].mxu1 %v359_v10  ;;  %v361_v15 = vmax.f32 %v355_v11, 0.0 }
 0x2b5   :  { %v360_v14 = vmax.f32 %v350_v13, 0.0 }
 0x2b7   :  { %772 = vmatprep.mubr.f32.mxu1 %v360_v14 }
 0x2b8   :  { %773 = vmatmul.mubr.f32.gmra.mrb[6].mxu1 %v361_v15 }
 0x387   :  { %v771_v17 = vpop.f32.mrb[4].mxu1 }
 0x388   :  { %v459_v18 = vadd.f32 %v771_v17, %v542_v16  ;;  %v453_v19 = vpop.f32.mrb[5].mxu1 }
 0x389   :  { %v454_v20 = vadd.f32 %v542_v16, %v453_v19 }
 0x38a   :  { %v473_v21 = vadd.f32 %v459_v18, %v245_v62 }
 0x38b   :  { %v472_v22 = vadd.f32 %v454_v20, %v244_v60  ;;  %v774_v23 = vpop.f32.mrb[6].mxu1 }
 0x38c   :  { %v477_v24 = vmax.f32 %v473_v21, 0.0  ;;  %v469_v25 = vadd.f32 %v774_v23, %v542_v16  ;;  %v463_v26 = vpop.f32.mrb[7].mxu1 }
 0x38d   :  { %v476_v27 = vmax.f32 %v472_v22, 0.0  ;;  %v464_v28 = vadd.f32 %v542_v16, %v463_v26 }
 0x38e   :  { %481 = vst [vmem:[%s1170_s3 + $0x8] sm:$0xff] %v477_v24  ;;  %v475_v29 = vadd.f32 %v469_v25, %v247_v2 }
 0x38f   :  { %480 = vst [vmem:[%s1170_s3] sm:$0xff] %v476_v27  ;;  %v474_v30 = vadd.f32 %v464_v28, %v246_v1 }
 0x390   :  { %v479_v31 = vmax.f32 %v475_v29, 0.0 }
 0x391   :  { %v478_v32 = vmax.f32 %v474_v30, 0.0 }
 0x392   :  { %483 = vst [vmem:[%s1170_s3 + $0x18] sm:$0xff] %v479_v31 }
 0x393   :  { %482 = vst [vmem:[%s1170_s3 + $0x10] sm:$0xff] %v478_v32 }

</bundles_post_ra>
